<compile_context>
chip_gen: v6e
topology: v6e:2x2x1
jax: 0.10.0
libtpu: 0.0.40
codegen_flags: <defaults>
</compile_context>

<pallas_src>
import itertools

import numpy as np
import jax
import jax.numpy as jnp
from jax import lax
from jax.experimental import pallas as pl
from jax.experimental.pallas import tpu as pltpu


# --------------------------------------------------------------------------
# configuration
# --------------------------------------------------------------------------
def _default_vmem_limit():
    # Generation-aware scoped-VMEM cap: half of physical VMEM, capped at 64MiB
    # (v7x has 64 MiB/TC), with a safe 32 MiB fallback.
    try:
        cap = getattr(pltpu.get_tpu_info(), "vmem_capacity_bytes", None)
        if cap:
            return int(max(min(cap // 2, 64 * 1024 * 1024), 16 * 1024 * 1024))
    except Exception:
        pass
    return 32 * 1024 * 1024


_VMEM_LIMIT = _default_vmem_limit()
_TILE_BUDGET = min(12 * 1024 * 1024, _VMEM_LIMIT // 2)
_LM_THRESHOLD = 256          # use transposed (L-major) GEMM when B*Din^3 < this


# --------------------------------------------------------------------------
# small helpers
# --------------------------------------------------------------------------
def _pick(dim, candidates):
    for c in candidates:
        if dim % c == 0:
            return c
    return dim


def _pad_axis(x, axis, mult):
    pad = (-x.shape[axis]) % mult
    if pad == 0:
        return x
    widths = [(0, 0)] * x.ndim
    widths[axis] = (0, pad)
    return jnp.pad(x, widths)


def _fp_bytes(tm, tk, tn, a_bytes, b_bytes):
    # double-buffered A, B, bf16 output + f32 accumulator scratch
    return (2 * tm * tk * a_bytes + 2 * tk * tn * b_bytes
            + 2 * tm * tn * 2 + tm * tn * 4)


def _plan_gemm(M, K, N, a_bytes, b_bytes):
    """Pick (tm, tk, tn, pad_n) with a hard VMEM footprint budget."""
    tk = _pick(K, (512, 256, 128))
    tn = None
    for cand in (4096, 2048, 1024, 512, 256, 128):
        if N % cand == 0 and 2 * tk * cand * b_bytes <= _TILE_BUDGET // 3:
            tn = cand
            break
    pad_n = 0
    if tn is None:
        if N <= 4096:
            tn = N                              # full-dim lane block (small)
        else:
            tn = 512
            pad_n = (-N) % 512
    tm = M
    for cand in (2048, 1024, 512, 256, 128, 64, 32, 16, 8):
        if M % cand == 0 and _fp_bytes(cand, tk, tn, a_bytes, b_bytes) <= _TILE_BUDGET:
            tm = cand
            break
    return tm, tk, tn, pad_n


def _moments(x, axis):
    # TODO(synk): E[x^2]-E[x]^2 can cancel when |mean| >> std; acceptable here.
    xf = x.astype(jnp.float32)
    m = jnp.mean(xf, axis=axis)
    v = jnp.maximum(jnp.mean(xf * xf, axis=axis) - m * m, 0.0)
    return m, v


# --------------------------------------------------------------------------
# generic batched matmul (bf16 operands, f32 accumulation) for the lookup
# --------------------------------------------------------------------------
def _bmm_kernel(a_ref, b_ref, o_ref, acc_ref):
    @pl.when(pl.program_id(3) == 0)
    def _():
        acc_ref[...] = jnp.zeros_like(acc_ref)

    acc_ref[...] += jnp.dot(a_ref[0], b_ref[0],
                            preferred_element_type=jnp.float32)

    @pl.when(pl.program_id(3) == pl.num_programs(3) - 1)
    def _():
        o_ref[0] = acc_ref[...].astype(o_ref.dtype)


def bmm(a, b, out_dtype=jnp.bfloat16):
    """a: (G, M, K), b: (G, K, N) -> (G, M, N) in out_dtype."""
    G, M0, K0 = a.shape
    N0 = b.shape[2]
    a = _pad_axis(_pad_axis(a.astype(jnp.bfloat16), 1, 16), 2, 16)
    b = _pad_axis(b.astype(jnp.bfloat16), 1, 16)
    if N0 > 128:
        b = _pad_axis(b, 2, 128)
    M, K = a.shape[1], a.shape[2]
    N = b.shape[2]
    tm, tk, tn, pad_n = _plan_gemm(M, K, N, 2, 2)
    if pad_n:
        b = _pad_axis(b, 2, tn)
        N = b.shape[2]
    grid = (G, M // tm, N // tn, K // tk)

    out = pl.pallas_call(
        _bmm_kernel,
        out_shape=jax.ShapeDtypeStruct((G, M, N), out_dtype),
        grid_spec=pltpu.PrefetchScalarGridSpec(
            num_scalar_prefetch=0,
            grid=grid,
            in_specs=[
                pl.BlockSpec((1, tm, tk), lambda g, i, j, k: (g, i, k)),
                pl.BlockSpec((1, tk, tn), lambda g, i, j, k: (g, k, j)),
            ],
            out_specs=pl.BlockSpec((1, tm, tn), lambda g, i, j, k: (g, i, j)),
            scratch_shapes=[pltpu.VMEM((tm, tn), jnp.float32)],
        ),
        compiler_params=pltpu.CompilerParams(
            dimension_semantics=("parallel", "parallel", "parallel", "arbitrary"),
            vmem_limit_bytes=_VMEM_LIMIT),
    )(a, b)
    if M != M0 or N != N0:
        out = out[:, :M0, :N0]
    return out


# --------------------------------------------------------------------------
# Fused (BatchNorm-affine + ReLU + ConvTranspose-GEMM) kernels, bf16 output
#   channel-major:  Y (64Cout, L)  = W2 (64Cout, Cin) @ relu(X*s+t) (Cin, L)
#   L-major (small L):  Y^T (L, 64Cout) = relu(X^T*s+t) (L, Cin) @ W2^T
# --------------------------------------------------------------------------
def _conv_gemm_cm_kernel(w_ref, x_ref, s_ref, t_ref, o_ref, acc_ref):
    @pl.when(pl.program_id(2) == 0)
    def _():
        acc_ref[...] = jnp.zeros_like(acc_ref)

    xb = x_ref[...].astype(jnp.float32) * s_ref[...] + t_ref[...]
    xb = jnp.maximum(xb, 0.0).astype(jnp.bfloat16)
    acc_ref[...] += jnp.dot(w_ref[...], xb, preferred_element_type=jnp.float32)

    @pl.when(pl.program_id(2) == pl.num_programs(2) - 1)
    def _():
        o_ref[...] = acc_ref[...].astype(o_ref.dtype)


def _conv_gemm_lm_kernel(x_ref, w_ref, s_ref, t_ref, o_ref, acc_ref):
    @pl.when(pl.program_id(2) == 0)
    def _():
        acc_ref[...] = jnp.zeros_like(acc_ref)

    a = x_ref[...].astype(jnp.float32) * s_ref[...] + t_ref[...]
    a = jnp.maximum(a, 0.0).astype(jnp.bfloat16)
    acc_ref[...] += jnp.dot(a, w_ref[...], preferred_element_type=jnp.float32)

    @pl.when(pl.program_id(2) == pl.num_programs(2) - 1)
    def _():
        o_ref[...] = acc_ref[...].astype(o_ref.dtype)


def _conv_gemm_cm(w2, x, scale, shift):
    """w2: (M,K) bf16; x: (K,N); scale/shift: (K,1) f32 -> (M, Np) bf16."""
    M, K = w2.shape
    N0 = x.shape[1]
    tm, tk, tn, pad_n = _plan_gemm(M, K, N0, 2, x.dtype.itemsize)
    if pad_n:
        x = _pad_axis(x, 1, tn)
    N = x.shape[1]
    grid = (M // tm, N // tn, K // tk)
    return pl.pallas_call(
        _conv_gemm_cm_kernel,
        out_shape=jax.ShapeDtypeStruct((M, N), jnp.bfloat16),
        grid_spec=pltpu.PrefetchScalarGridSpec(
            num_scalar_prefetch=0,
            grid=grid,
            in_specs=[
                pl.BlockSpec((tm, tk), lambda i, j, k: (i, k)),
                pl.BlockSpec((tk, tn), lambda i, j, k: (k, j)),
                pl.BlockSpec((tk, 1), lambda i, j, k: (k, 0)),
                pl.BlockSpec((tk, 1), lambda i, j, k: (k, 0)),
            ],
            out_specs=pl.BlockSpec((tm, tn), lambda i, j, k: (i, j)),
            scratch_shapes=[pltpu.VMEM((tm, tn), jnp.float32)],
        ),
        compiler_params=pltpu.CompilerParams(
            dimension_semantics=("parallel", "parallel", "arbitrary"),
            vmem_limit_bytes=_VMEM_LIMIT),
    )(w2, x, scale, shift)


def _conv_gemm_lm(x, w2t, scale, shift):
    """x: (L,K); w2t: (K,M) bf16; scale/shift: (1,K) f32 -> (Lp, Mp) bf16."""
    x = _pad_axis(x, 0, 8)
    R, K = x.shape
    N0 = w2t.shape[1]
    tm, tk, tn, pad_n = _plan_gemm(R, K, N0, x.dtype.itemsize, 2)
    if pad_n:
        w2t = _pad_axis(w2t, 1, tn)
    N = w2t.shape[1]
    grid = (R // tm, N // tn, K // tk)
    return pl.pallas_call(
        _conv_gemm_lm_kernel,
        out_shape=jax.ShapeDtypeStruct((R, N), jnp.bfloat16),
        grid_spec=pltpu.PrefetchScalarGridSpec(
            num_scalar_prefetch=0,
            grid=grid,
            in_specs=[
                pl.BlockSpec((tm, tk), lambda i, j, k: (i, k)),
                pl.BlockSpec((tk, tn), lambda i, j, k: (k, j)),
                pl.BlockSpec((1, tk), lambda i, j, k: (0, k)),
                pl.BlockSpec((1, tk), lambda i, j, k: (0, k)),
            ],
            out_specs=pl.BlockSpec((tm, tn), lambda i, j, k: (i, j)),
            scratch_shapes=[pltpu.VMEM((tm, tn), jnp.float32)],
        ),
        compiler_params=pltpu.CompilerParams(
            dimension_semantics=("parallel", "parallel", "arbitrary"),
            vmem_limit_bytes=_VMEM_LIMIT),
    )(x, w2t, scale, shift)


# --------------------------------------------------------------------------
# col2im for ConvTranspose3d(k=4, s=2, p=1) + fused bias / BN-stats / sigmoid
# (XLA epilogue of the GEMM; everything here is one fused pass over Y).
# --------------------------------------------------------------------------
_KMAP = ((3, 1), (2, 0))     # (output parity r, tap t) -> kernel index k


def _overlap_add(T):
    """T: (4,4,4,Cout,B,D,D,D) f32 -> parity blocks (2,2,2,Cout,B,D,D,D)."""
    zero = jnp.array(0.0, T.dtype)
    blocks = []
    for rd, rh, rw in itertools.product((0, 1), repeat=3):
        acc = None
        for td, th, tw in itertools.product((0, 1), repeat=3):
            kd, kh, kw = _KMAP[rd][td], _KMAP[rh][th], _KMAP[rw][tw]
            sd, sh, sw = td - 1 + rd, th - 1 + rh, tw - 1 + rw
            blk = T[kd, kh, kw]
            shifted = lax.pad(blk, zero,
                              [(0, 0, 0), (0, 0, 0),
                               (-sd, sd, 0), (-sh, sh, 0), (-sw, sw, 0)])
            acc = shifted if acc is None else acc + shifted
        blocks.append(acc)
    return jnp.stack(blocks, 0).reshape((2, 2, 2) + T.shape[3:])


def _col2im_bias_act(T, bias, out_layout, want_stats, apply_sigmoid):
    cout, batch, d = T.shape[3], T.shape[4], T.shape[5]
    dout = 2 * d
    P = _overlap_add(T)
    stats = None
    if want_stats:                      # batch-norm stats of (P + bias), fused
        n = 8 * batch * d ** 3
        s1 = jnp.sum(P, axis=(0, 1, 2, 4, 5, 6, 7))
        s2 = jnp.sum(P * P, axis=(0, 1, 2, 4, 5, 6, 7))
        m = s1 / n
        var = jnp.maximum(s2 / n - m * m, 0.0)
        stats = (m + bias, var)
    Pb = P + bias.reshape(1, 1, 1, cout, 1, 1, 1, 1)
    if out_layout == "cm":              # (Cout, B*Dout^3)
        out = jnp.transpose(Pb, (3, 4, 5, 0, 6, 1, 7, 2))
        out = out.reshape(cout, batch * dout ** 3).astype(jnp.bfloat16)
    elif out_layout == "lm":            # (B*Dout^3, Cout)
        out = jnp.transpose(Pb, (4, 5, 0, 6, 1, 7, 2, 3))
        out = out.reshape(batch * dout ** 3, cout).astype(jnp.bfloat16)
    else:                               # "ncdhw": (B, Cout, Dout, Dout, Dout)
        out = jnp.transpose(Pb, (4, 3, 5, 0, 6, 1, 7, 2))
        out = out.reshape(batch, cout, dout, dout, dout)
        if apply_sigmoid:
            out = jax.nn.sigmoid(out)
    if want_stats:
        return out, stats
    return out


def conv_bn_layer(x, layout, scale, shift, bias, w2, w2t, batch, din,
                  out_layout, want_stats=False, apply_sigmoid=False):
    """BatchNorm affine + ReLU + ConvTranspose3d(4, 2, 1), fused."""
    cout = bias.shape[0]
    L = batch * din ** 3
    n64 = 64 * cout
    if layout == "lm":
        y = _conv_gemm_lm(x, w2t,
                          scale.reshape(1, -1).astype(jnp.float32),
                          shift.reshape(1, -1).astype(jnp.float32))
        if y.shape[0] != L or y.shape[1] != n64:
            y = y[:L, :n64]
        T = y.reshape(batch, din, din, din, 4, 4, 4, cout)
        T = jnp.transpose(T, (4, 5, 6, 7, 0, 1, 2, 3)).astype(jnp.float32)
    else:
        y = _conv_gemm_cm(w2, x,
                          scale.reshape(-1, 1).astype(jnp.float32),
                          shift.reshape(-1, 1).astype(jnp.float32))
        if y.shape[1] != L:
            y = y[:, :L]
        T = y.reshape(4, 4, 4, cout, batch, din, din, din).astype(jnp.float32)
    return _col2im_bias_act(T, bias, out_layout, want_stats, apply_sigmoid)


# --------------------------------------------------------------------------
# multiHeadedConv3DLookupLayer (kernel_size = 1), L-major output,
# no Hn-fold replication of the target
# --------------------------------------------------------------------------
def multihead_lookup_lm(query, target, tables_r, c_heads):
    """query: (B,nq); target: (B,Cin,D,H,W); tables_r: (nq, Cin*c_heads) bf16.
    Returns (B*D*H*W, c_heads) with rows ordered (b, d, h, w)."""
    B, cin = target.shape[0], target.shape[1]
    V = int(np.prod(target.shape[2:]))
    w_all = bmm(query[None], tables_r[None], out_dtype=jnp.bfloat16)[0]
    w_all = w_all.reshape(B, cin, c_heads)                 # per-sample weights
    xt = jnp.transpose(target.reshape(B, cin, V), (0, 2, 1))   # (B, V, Cin)
    y = bmm(xt, w_all, out_dtype=jnp.bfloat16)             # (B, V, c_heads)
    return y.reshape(B * V, c_heads)


# --------------------------------------------------------------------------
# Dec forward
# --------------------------------------------------------------------------
def dec_forward(params, x_in, y_in):
    # TODO(synk): nn.parallel.data_parallel is a multi-GPU dispatch no-op on a
    # single device; the wrapped Sequential's semantics are reproduced directly.
    batch, cin0 = x_in.shape[0], x_in.shape[1]
    d = int(x_in.shape[2])
    c0 = params["tables_r"].shape[1] // cin0
    xt = multihead_lookup_lm(y_in, x_in, params["tables_r"], c0)

    mean, var = _moments(xt, axis=0)
    if batch * d ** 3 < _LM_THRESHOLD:
        x, layout = xt, "lm"
    else:
        x, layout = jnp.transpose(xt, (1, 0)), "cm"

    for li in range(1, 6):
        gamma = params[f"bn{li - 1}_g"]
        beta = params[f"bn{li - 1}_b"]
        rstd = lax.rsqrt(var + 1e-5)
        scale = gamma * rstd
        shift = beta - mean * scale
        is_last = li == 5
        next_l = batch * (2 * d) ** 3
        if is_last:
            out_layout = "ncdhw"
        elif next_l < _LM_THRESHOLD:
            out_layout = "lm"
        else:
            out_layout = "cm"
        res = conv_bn_layer(
            x, layout, scale, shift, params[f"b{li}"],
            params.get(f"w2_{li}"), params.get(f"w2t_{li}"),
            batch, d, out_layout,
            want_stats=not is_last, apply_sigmoid=is_last)
        if is_last:
            return res
        x, (mean, var) = res
        layout = out_layout
        d *= 2


# --------------------------------------------------------------------------
# parameter packing (done ONCE at init; no per-forward weight transposes)
# --------------------------------------------------------------------------
def _pack_convT_weight(w):
    """w: (Cin, Cout, 4,4,4) PyTorch ConvTranspose3d -> (W2 bf16, W2^T bf16)."""
    cin, cout = w.shape[0], w.shape[1]
    w2 = jnp.transpose(w, (2, 3, 4, 1, 0)).reshape(64 * cout, cin)
    return w2.astype(jnp.bfloat16), jnp.transpose(w2, (1, 0)).astype(jnp.bfloat16)


def _pack_tables(tables, cin):
    """tables: (Hn, nq, Cout*Cin) torch layout -> (nq, Cin*Hn*Cout) bf16."""
    hn, nq, cc = tables.shape
    cout = cc // cin
    tr = tables.reshape(hn, nq, cout, cin)
    tr = jnp.transpose(tr, (1, 3, 0, 2)).reshape(nq, cin * hn * cout)
    return tr.astype(jnp.bfloat16)


def init_params(key, n_classes, n_proj_dims, n_lookup_heads):
    ks = jax.random.split(key, 16)
    n_ch_in_lookup = 1024                 # hardcoded in the PyTorch module
    chans = [n_proj_dims * n_lookup_heads, 512, 256, 128, 32, 1]
    p = {}
    tables = 0.02 * jax.random.normal(
        ks[0], (n_lookup_heads, n_classes, n_proj_dims * n_ch_in_lookup),
        jnp.float32)
    p["tables_r"] = _pack_tables(tables, n_ch_in_lookup)
    for li in range(5):
        cin, cout = chans[li], chans[li + 1]
        w = 0.02 * jax.random.normal(ks[1 + li], (cin, cout, 4, 4, 4), jnp.float32)
        w2, w2t = _pack_convT_weight(w)
        p[f"w2_{li + 1}"] = w2
        if li < 2:                        # only early (small-L) layers need W2^T
            p[f"w2t_{li + 1}"] = w2t
        p[f"b{li + 1}"] = 0.02 * jax.random.normal(ks[6 + li], (cout,), jnp.float32)
        p[f"bn{li}_g"] = jnp.ones((cin,), jnp.float32)
        p[f"bn{li}_b"] = jnp.zeros((cin,), jnp.float32)
    return p


# --------------------------------------------------------------------------
# numpy references for self-checks
# --------------------------------------------------------------------------
def _ref_conv_transpose3d(x, w, b):
    B, Cin, D = x.shape[0], x.shape[1], x.shape[2]
    Cout = w.shape[1]
    Do = 2 * D
    out = np.tile(b.reshape(1, Cout, 1, 1, 1), (B, 1, Do, Do, Do)).astype(np.float32)
    for n in range(B):
        for ci in range(Cin):
            for idd in range(D):
                for ih in range(D):
                    for iw in range(D):
                        v = x[n, ci, idd, ih, iw]
                        for kd in range(4):
                            od = 2 * idd - 1 + kd
                            if od < 0 or od >= Do:
                                continue
                            for kh in range(4):
                                oh = 2 * ih - 1 + kh
                                if oh < 0 or oh >= Do:
                                    continue
                                for kw in range(4):
                                    ow = 2 * iw - 1 + kw
                                    if ow < 0 or ow >= Do:
                                        continue
                                    out[n, :, od, oh, ow] += v * w[ci, :, kd, kh, kw]
    return out


def _ref_bn_relu_convT(x, gamma, beta, w, b, eps=1e-5):
    mean = x.mean(axis=(0, 2, 3, 4), keepdims=True)
    var = x.var(axis=(0, 2, 3, 4), keepdims=True)
    xn = (x - mean) / np.sqrt(var + eps)
    xn = xn * gamma.reshape(1, -1, 1, 1, 1) + beta.reshape(1, -1, 1, 1, 1)
    xn = np.maximum(xn, 0.0)
    return _ref_conv_transpose3d(xn, w, b)


def _ref_lookup(query, target, tables):
    Hn, nq, cincout = tables.shape
    B, Cin = target.shape[:2]
    Cout = cincout // Cin
    tflat = target.reshape(B, Cin, -1)
    outs = []
    for h in range(Hn):
        wh = (query @ tables[h]).reshape(B, Cout, Cin)
        outs.append(np.einsum("boc,bcv->bov", wh, tflat))
    out = np.concatenate(outs, axis=1)
    return out.reshape(B, Hn * Cout, *target.shape[2:])


# --------------------------------------------------------------------------
if __name__ == "__main__":
    key = jax.random.PRNGKey(0)
    (k_param, k_x, k_y, k_cx, k_cw, k_cb, k_cg, k_cbeta, k_lt) = jax.random.split(key, 9)

    n_classes, n_proj_dims, n_lookup_heads = 4, 8, 2
    B, Din0 = 2, 2

    params = init_params(k_param, n_classes, n_proj_dims, n_lookup_heads)
    x_in = jax.random.normal(k_x, (B, 1024, Din0, Din0, Din0), jnp.float32)
    y_in = jax.random.normal(k_y, (B, n_classes), jnp.float32)

    # --- fused BN+ReLU+ConvTranspose layer vs numpy (both GEMM orientations) ---
    Bt, Cint, Dt, Coutt = 2, 8, 4, 16
    xc = jax.random.normal(k_cx, (Bt, Cint, Dt, Dt, Dt), jnp.float32)
    wc = 0.05 * jax.random.normal(k_cw, (Cint, Coutt, 4, 4, 4), jnp.float32)
    bc = 0.05 * jax.random.normal(k_cb, (Coutt,), jnp.float32)
    gc = 1.0 + 0.1 * jax.random.normal(k_cg, (Cint,), jnp.float32)
    betac = 0.1 * jax.random.normal(k_cbeta, (Cint,), jnp.float32)
    w2c, w2tc = _pack_convT_weight(wc)

    mean_c, var_c = _moments(xc, axis=(0, 2, 3, 4))
    rstd_c = lax.rsqrt(var_c + 1e-5)
    scale_c = gc * rstd_c
    shift_c = betac - mean_c * scale_c
    ref_c = _ref_bn_relu_convT(np.asarray(xc), np.asarray(gc), np.asarray(betac),
                               np.asarray(wc), np.asarray(bc))

    x_cm = jnp.transpose(xc, (1, 0, 2, 3, 4)).reshape(Cint, Bt * Dt ** 3)
    got_cm = conv_bn_layer(x_cm, "cm", scale_c, shift_c, bc, w2c, None,
                           Bt, Dt, "ncdhw")
    np.testing.assert_allclose(np.asarray(got_cm), ref_c, rtol=3e-2, atol=3e-2)

    x_lm = jnp.transpose(xc, (0, 2, 3, 4, 1)).reshape(Bt * Dt ** 3, Cint)
    got_lm = conv_bn_layer(x_lm, "lm", scale_c, shift_c, bc, None, w2tc,
                           Bt, Dt, "ncdhw")
    np.testing.assert_allclose(np.asarray(got_lm), ref_c, rtol=3e-2, atol=3e-2)

    # --- lookup layer vs numpy reference ---
    tables_t = 0.02 * jax.random.normal(
        k_lt, (n_lookup_heads, n_classes, n_proj_dims * 1024), jnp.float32)
    tables_r_t = _pack_tables(tables_t, 1024)
    C0 = n_lookup_heads * n_proj_dims
    got_l = np.asarray(
        multihead_lookup_lm(y_in, x_in, tables_r_t, C0).astype(jnp.float32))
    got_l = got_l.reshape(B, Din0, Din0, Din0, C0).transpose(0, 4, 1, 2, 3)
    ref_l = _ref_lookup(np.asarray(y_in), np.asarray(x_in), np.asarray(tables_t))
    np.testing.assert_allclose(got_l, ref_l, rtol=3e-2, atol=3e-2)

    # --- full Dec forward ---
    out = jax.jit(dec_forward)(params, x_in, y_in)
    out = jax.block_until_ready(out)
    assert out.shape == (B, 1, 64, 64, 64), out.shape
    assert bool(jnp.all(jnp.isfinite(out)))
    assert bool(jnp.all((out >= 0.0) & (out <= 1.0)))
    print("KERNEL_OK")
</pallas_src>

<mosaic_0001>
module attributes {stable_mosaic.version = 11 : i64} {
  func.func @_conv_gemm_cm_kernel(%arg0: i32, %arg1: i32, %arg2: i32, %arg3: memref<1024x8xbf16, #tpu.memory_space<vmem>>, %arg4: memref<8x128xf32, #tpu.memory_space<vmem>>, %arg5: memref<8x1xf32, #tpu.memory_space<vmem>>, %arg6: memref<8x1xf32, #tpu.memory_space<vmem>>, %arg7: memref<1024x128xbf16, #tpu.memory_space<vmem>>, %arg8: memref<1024x128xf32, #tpu.memory_space<vmem>>) attributes {dimension_semantics = [#tpu.dimension_semantics<parallel>, #tpu.dimension_semantics<parallel>, #tpu.dimension_semantics<arbitrary>], iteration_bounds = array<i64: 1, 1, 1>, scalar_prefetch = 0 : i64, scratch_operands = 1 : i64, tpu.core_type = #tpu.core_type<tc>, window_params = [{transform_indices = @transform_0, window_bounds = array<i64: 1024, 8>}, {transform_indices = @transform_1, window_bounds = array<i64: 8, 128>}, {transform_indices = @transform_2, window_bounds = array<i64: 8, 1>}, {transform_indices = @transform_3, window_bounds = array<i64: 8, 1>}, {transform_indices = @transform_4, window_bounds = array<i64: 1024, 128>}]} {
    %c0_i32 = arith.constant 0 : i32
    %0 = arith.cmpi eq, %arg2, %c0_i32 : i32
    %1 = arith.extui %0 : i1 to i32
    %c0_i32_0 = arith.constant 0 : i32
    %2 = arith.cmpi ne, %1, %c0_i32_0 : i32
    scf.if %2 {
      %cst_15 = arith.constant 0.000000e+00 : f32
      %21 = vector.broadcast %cst_15 : f32 to vector<1024x128xf32>
      %c0_16 = arith.constant 0 : index
      %c0_17 = arith.constant 0 : index
      %22 = vector.load %arg8[%c0_16, %c0_17] : memref<1024x128xf32, #tpu.memory_space<vmem>>, vector<1024x128xf32>
      tpu.vector_store %arg8[%c0_16, %c0_17], %21 {strides = array<i32>} : memref<1024x128xf32, #tpu.memory_space<vmem>>, vector<1024x128xf32>,
    } else {
    }
    %c0 = arith.constant 0 : index
    %c0_1 = arith.constant 0 : index
    %3 = vector.load %arg4[%c0, %c0_1] : memref<8x128xf32, #tpu.memory_space<vmem>>, vector<8x128xf32>
    %c0_2 = arith.constant 0 : index
    %c0_3 = arith.constant 0 : index
    %4 = vector.load %arg5[%c0_2, %c0_3] : memref<8x1xf32, #tpu.memory_space<vmem>>, vector<8x1xf32>
    %5 = vector.broadcast %4 : vector<8x1xf32> to vector<8x128xf32>
    %6 = arith.mulf %3, %5 : vector<8x128xf32>
    %c0_4 = arith.constant 0 : index
    %c0_5 = arith.constant 0 : index
    %7 = vector.load %arg6[%c0_4, %c0_5] : memref<8x1xf32, #tpu.memory_space<vmem>>, vector<8x1xf32>
    %8 = vector.broadcast %7 : vector<8x1xf32> to vector<8x128xf32>
    %9 = arith.addf %6, %8 : vector<8x128xf32>
    %cst = arith.constant 0.000000e+00 : f32
    %10 = vector.broadcast %cst : f32 to vector<8x128xf32>
    %11 = arith.maximumf %9, %10 : vector<8x128xf32>
    %12 = arith.truncf %11 : vector<8x128xf32> to vector<8x128xbf16>
    %c0_6 = arith.constant 0 : index
    %c0_7 = arith.constant 0 : index
    %13 = vector.load %arg8[%c0_6, %c0_7] : memref<1024x128xf32, #tpu.memory_space<vmem>>, vector<1024x128xf32>
    %c0_8 = arith.constant 0 : index
    %c0_9 = arith.constant 0 : index
    %14 = vector.load %arg3[%c0_8, %c0_9] : memref<1024x8xbf16, #tpu.memory_space<vmem>>, vector<1024x8xbf16>
    %cst_10 = arith.constant dense<0.000000e+00> : vector<1024x128xf32>
    %15 = tpu.matmul %14, %12, %cst_10 {dimension_numbers = #tpu.dot_dimension_numbers<[1], [0], [0], [1], [0, 0, 1, 1], [], []>} : vector<1024x8xbf16>, vector<8x128xbf16>, vector<1024x128xf32> -> vector<1024x128xf32>
    %16 = arith.addf %13, %15 : vector<1024x128xf32>
    %c0_11 = arith.constant 0 : index
    %c0_12 = arith.constant 0 : index
    %17 = vector.load %arg8[%c0_11, %c0_12] : memref<1024x128xf32, #tpu.memory_space<vmem>>, vector<1024x128xf32>
    tpu.vector_store %arg8[%c0_11, %c0_12], %16 {strides = array<i32>} : memref<1024x128xf32, #tpu.memory_space<vmem>>, vector<1024x128xf32>,
    %c0_i32_13 = arith.constant 0 : i32
    %18 = arith.cmpi eq, %arg2, %c0_i32_13 : i32
    %19 = arith.extui %18 : i1 to i32
    %c0_i32_14 = arith.constant 0 : i32
    %20 = arith.cmpi ne, %19, %c0_i32_14 : i32
    scf.if %20 {
      %c0_15 = arith.constant 0 : index
      %c0_16 = arith.constant 0 : index
      %21 = vector.load %arg8[%c0_15, %c0_16] : memref<1024x128xf32, #tpu.memory_space<vmem>>, vector<1024x128xf32>
      %22 = arith.truncf %21 : vector<1024x128xf32> to vector<1024x128xbf16>
      %c0_17 = arith.constant 0 : index
      %c0_18 = arith.constant 0 : index
      %23 = vector.load %arg7[%c0_17, %c0_18] : memref<1024x128xbf16, #tpu.memory_space<vmem>>, vector<1024x128xbf16>
      tpu.vector_store %arg7[%c0_17, %c0_18], %22 {strides = array<i32>} : memref<1024x128xbf16, #tpu.memory_space<vmem>>, vector<1024x128xbf16>,
    } else {
    }
    return
  }
  func.func @transform_0(%arg0: i32, %arg1: i32, %arg2: i32) -> (i32, i32) {
    %c0_i32 = arith.constant 0 : i32
    return %arg0, %arg2 : i32, i32
  }
  func.func @transform_1(%arg0: i32, %arg1: i32, %arg2: i32) -> (i32, i32) {
    %c0_i32 = arith.constant 0 : i32
    return %arg2, %arg1 : i32, i32
  }
  func.func @transform_2(%arg0: i32, %arg1: i32, %arg2: i32) -> (i32, i32) {
    %c0_i32 = arith.constant 0 : i32
    %c0_i32_0 = arith.constant 0 : i32
    return %arg2, %c0_i32 : i32, i32
  }
  func.func @transform_3(%arg0: i32, %arg1: i32, %arg2: i32) -> (i32, i32) {
    %c0_i32 = arith.constant 0 : i32
    %c0_i32_0 = arith.constant 0 : i32
    return %arg2, %c0_i32 : i32, i32
  }
  func.func @transform_4(%arg0: i32, %arg1: i32, %arg2: i32) -> (i32, i32) {
    %c0_i32 = arith.constant 0 : i32
    return %arg0, %arg1 : i32, i32
  }
}

</mosaic_0001>

<bundles_post_ra>
// kernel: tpu_custom_call.1
= control target key start
LH: loop header
LB: loop body
LE: loop exit
PB: predicated region body
PF: predicated region fallthrough
CT: control target
= control target key end

     0   :  { %v3586_v1 = vmov 0   ;;  %vm744_vm0 = vcmask 64512   ;;  %s3883_s0 = inlined_call_operand.vmem [shape: bf16[1024,8], index: 0, kind: input, shape index: {}]   ;;  %s3884_s1 = inlined_call_operand.vmem [shape: f32[8,128], index: 1, kind: input, shape index: {}]   ;;  %s3885_s2 = inlined_call_operand.vmem [shape: f32[8,1], index: 2, kind: input, shape index: {}]   ;;  %s3886_s3 = inlined_call_operand.vmem [shape: f32[8,1], index: 3, kind: input, shape index: {}]   ;;  %s3887_s4 = inlined_call_operand.hbm [shape: bf16[1024,128], index: 4, kind: output, shape index: {}]  }
   0x1   :  { %v152_v0 = vld [vmem:[%s3885_s2] sm:$0xff]  ;;  %3499 = vset.pattern.permute.xlu0 %v3586_v1 }
   0x2   :  { %v159_v2 = vld [vmem:[%s3886_s3] sm:$0xff]  ;;  %155 = vperm.xlu0 %3499, %v152_v0  }
   0x3   :  { %v3500_v3 = vld [vmem:[%s3883_s0] sm:$0xff]  }
   0x4   :  { %v3501_v4 = vld [vmem:[%s3883_s0 + $0x100] sm:$0xff]   ;;  %3363 = vmatprep.mubr.msk.bf16.mxu0 %vm744_vm0, %v3500_v3 }
   0x5   :  { %3427 = vmatprep.mubr.msk.bf16.mxu1 %vm744_vm0, %v3501_v4 }
   0x6   :  { %162 = vperm.xlu0 %3499, %v159_v2  }
   0x7   :  { %9 = vsyncpa [#allocation4], 0  ;;  %v151_v6 = vld [vmem:[%s3884_s1] sm:$0xff]  ;;  %vm937_vm1 = vcmask 1043456   ;;  %v3502_v13 = vld [vmem:[%s3883_s0 + $0x8] sm:$0xff]  }
   0x8   :  { %v3503_v14 = vld [vmem:[%s3883_s0 + $0x108] sm:$0xff]   ;;  %v3504_v15 = vld [vmem:[%s3883_s0 + $0x10] sm:$0xff]   ;;  %v3506_v17 = vld [vmem:[%s3883_s0 + $0x18] sm:$0xff]  }
   0x9   :  { %v3505_v16 = vld [vmem:[%s3883_s0 + $0x110] sm:$0xff]   ;;  %v3507_v18 = vld [vmem:[%s3883_s0 + $0x118] sm:$0xff]   ;;  %v3508_v19 = vld [vmem:[%s3883_s0 + $0x20] sm:$0xff]  }
   0xa   :  { %v3509_v20 = vld [vmem:[%s3883_s0 + $0x120] sm:$0xff]   ;;  %v3510_v21 = vld [vmem:[%s3883_s0 + $0x28] sm:$0xff]   ;;  %v3512_v23 = vld [vmem:[%s3883_s0 + $0x30] sm:$0xff]  }
   0xb   :  { %v3511_v22 = vld [vmem:[%s3883_s0 + $0x128] sm:$0xff]   ;;  %v3513_v24 = vld [vmem:[%s3883_s0 + $0x130] sm:$0xff]   ;;  %v3514_v25 = vld [vmem:[%s3883_s0 + $0x38] sm:$0xff]  }
   0xc   :  { %v3515_v26 = vld [vmem:[%s3883_s0 + $0x138] sm:$0xff]   ;;  %v3516_v27 = vld [vmem:[%s3883_s0 + $0x40] sm:$0xff]   ;;  %v3518_v29 = vld [vmem:[%s3883_s0 + $0x48] sm:$0xff]  }
   0xd   :  { %v3517_v28 = vld [vmem:[%s3883_s0 + $0x140] sm:$0xff]   ;;  %v3519_v30 = vld [vmem:[%s3883_s0 + $0x148] sm:$0xff]   ;;  %v3520_v31 = vld [vmem:[%s3883_s0 + $0x50] sm:$0xff]  }
   0xe   :  { %v3521_v32 = vld [vmem:[%s3883_s0 + $0x150] sm:$0xff]   ;;  %v3522_v33 = vld [vmem:[%s3883_s0 + $0x58] sm:$0xff]   ;;  %v3524_v35 = vld [vmem:[%s3883_s0 + $0x60] sm:$0xff]  }
   0xf   :  { %v3523_v34 = vld [vmem:[%s3883_s0 + $0x158] sm:$0xff]   ;;  %v3525_v36 = vld [vmem:[%s3883_s0 + $0x160] sm:$0xff]   ;;  %v3526_v37 = vld [vmem:[%s3883_s0 + $0x68] sm:$0xff]  }
  0x10   :  { %v3527_v38 = vld [vmem:[%s3883_s0 + $0x168] sm:$0xff]   ;;  %v3528_v39 = vld [vmem:[%s3883_s0 + $0x70] sm:$0xff]   ;;  %v3530_v41 = vld [vmem:[%s3883_s0 + $0x78] sm:$0xff]  }
  0x11   :  { %v3529_v40 = vld [vmem:[%s3883_s0 + $0x170] sm:$0xff]   ;;  %v3531_v42 = vld [vmem:[%s3883_s0 + $0x178] sm:$0xff]   ;;  %v3532_v43 = vld [vmem:[%s3883_s0 + $0x80] sm:$0xff]  }
  0x12   :  { %v3533_v44 = vld [vmem:[%s3883_s0 + $0x180] sm:$0xff]   ;;  %v3534_v45 = vld [vmem:[%s3883_s0 + $0x88] sm:$0xff]   ;;  %v3536_v47 = vld [vmem:[%s3883_s0 + $0x90] sm:$0xff]  }
  0x13   :  { %v3535_v46 = vld [vmem:[%s3883_s0 + $0x188] sm:$0xff]   ;;  %v3537_v48 = vld [vmem:[%s3883_s0 + $0x190] sm:$0xff]   ;;  %v3538_v49 = vld [vmem:[%s3883_s0 + $0x98] sm:$0xff]  }
  0x14   :  { %v3539_v50 = vld [vmem:[%s3883_s0 + $0x198] sm:$0xff]   ;;  %v3540_v51 = vld [vmem:[%s3883_s0 + $0xa0] sm:$0xff]   ;;  %v3542_v53 = vld [vmem:[%s3883_s0 + $0xa8] sm:$0xff]  }
  0x15   :  { %v3541_v52 = vld [vmem:[%s3883_s0 + $0x1a0] sm:$0xff]   ;;  %v3543_v54 = vld [vmem:[%s3883_s0 + $0x1a8] sm:$0xff]   ;;  %v3544_v55 = vld [vmem:[%s3883_s0 + $0xb0] sm:$0xff]  }
  0x16   :  { %v3545_v56 = vld [vmem:[%s3883_s0 + $0x1b0] sm:$0xff]   ;;  %v3546_v57 = vld [vmem:[%s3883_s0 + $0xb8] sm:$0xff]   ;;  %v3548_v59 = vld [vmem:[%s3883_s0 + $0xc0] sm:$0xff]  }
  0x17   :  { %v3547_v58 = vld [vmem:[%s3883_s0 + $0x1b8] sm:$0xff]   ;;  %v3549_v60 = vld [vmem:[%s3883_s0 + $0x1c0] sm:$0xff]   ;;  %v3550_v61 = vld [vmem:[%s3883_s0 + $0xc8] sm:$0xff]  }
  0x18   :  { %v3551_v62 = vld [vmem:[%s3883_s0 + $0x1c8] sm:$0xff]   ;;  %v3552_v63 = vld [vmem:[%s3883_s0 + $0xd0] sm:$0xff]   ;;  %v3554_v1 = vld [vmem:[%s3883_s0 + $0xd8] sm:$0xff]  }
  0x19   :  { %v3553_v0 = vld [vmem:[%s3883_s0 + $0x1d0] sm:$0xff]   ;;  %v3555_v2 = vld [vmem:[%s3883_s0 + $0x1d8] sm:$0xff]   ;;  %v3556_v3 = vld [vmem:[%s3883_s0 + $0xe0] sm:$0xff]  }
  0x1a   :  { %v3557_v4 = vld [vmem:[%s3883_s0 + $0x1e0] sm:$0xff]  }
  0x7d   :  { %v156_v5 = vpop.permute.xlu0 %155 }
  0x7e   :  { %v158_v7 = vmul.f32 %v156_v5, %v151_v6  ;;  %v3558_v5 = vld [vmem:[%s3883_s0 + $0xe8] sm:$0xff]  }
  0x7f   :  { %v3559_v6 = vld [vmem:[%s3883_s0 + $0x1e8] sm:$0xff]  }
  0x81   :  { %v163_v8 = vpop.permute.xlu0 %162 }
  0x82   :  { %v165_v9 = vadd.f32 %v163_v8, %v158_v7  ;;  %v3560_v7 = vld [vmem:[%s3883_s0 + $0xf0] sm:$0xff]  }
  0x83   :  { %v3561_v8 = vld [vmem:[%s3883_s0 + $0x1f0] sm:$0xff]  }
  0x84   :  { %v166_v10 = vmax.f32 %v165_v9, 0.0  ;;  %v3562_v9 = vld [vmem:[%s3883_s0 + $0xf8] sm:$0xff]  }
  0x86   :  { %v167_v11 = vpack.c.bf16 %v166_v10, %v166_v10  ;;  %v3563_v10 = vld [vmem:[%s3883_s0 + $0x1f8] sm:$0xff]   ;;  %s3587_s0 = smov [#allocation3]  }
  0x87   :  { %s2518_s30 = sshll.u32 %s3587_s0, 4  ;;  %s2519_s30 = int_to_ptr.vmem [resolvable:$true] %s2518_s30 }
  0x88   :  { %3493 = vmatprep.subr.msk.bf16.mxu0 %vm937_vm1, %v167_v11  ;;  %3494 = vmatprep.subr.msk.bf16.mxu1 %vm937_vm1, %v167_v11  ;;  %v939_v12 = vsel %vm937_vm1, %v167_v11, 0  ;;  %s3564_s5 = scalar_lea.vmem %s2519_s30, 8192  ;;  %p3569_p1 = scmp.lt.s32.totalorder %s2519_s30, %s2519_s30 }
  0x89   :  { %3362 = vmatpush3.bf16.msra.mxu0 %v939_v12  ;;  %3492 = vmatpush3.bf16.msra.mxu1 %v939_v12  ;;  %p3565_p0 = scmp.ne.s32.totalorder %s2519_s30, %s3564_s5  ;;  %p3570_p2 = scmp.lt.s32.totalorder %s3564_s5, %s3564_s5 }
  0x8b   :  { %p3571_p3 = por %p3570_p2, %p3569_p1 }
  0x8c   :  { %3364 = vmatmul.mubr.msk.bf16.vlgmr.msra.gmra.mxu0 %vm744_vm0, %v3502_v13  ;;  %3428 = vmatmul.mubr.msk.bf16.vlgmr.msra.gmra.mxu1 %vm744_vm0, %v3503_v14 }
  0x8d   :  { %3367 = vmatprep.mubr.msk.bf16.mxu0 %vm744_vm0, %v3504_v15  ;;  %3431 = vmatprep.mubr.msk.bf16.mxu1 %vm744_vm0, %v3505_v16  ;;  %p3572_p4 = pnand %p3571_p3, %p3565_p0 }
  0x94   :  { %3368 = vmatmul.mubr.msk.bf16.gmra.mxu0 %vm744_vm0, %v3506_v17  ;;  %3432 = vmatmul.mubr.msk.bf16.gmra.mxu1 %vm744_vm0, %v3507_v18 }
  0x95   :  { %3371 = vmatprep.mubr.msk.bf16.mxu0 %vm744_vm0, %v3508_v19  ;;  %3435 = vmatprep.mubr.msk.bf16.mxu1 %vm744_vm0, %v3509_v20 }
  0x9c   :  { %3372 = vmatmul.mubr.msk.bf16.gmra.mxu0 %vm744_vm0, %v3510_v21  ;;  %3436 = vmatmul.mubr.msk.bf16.gmra.mxu1 %vm744_vm0, %v3511_v22 }
  0x9d   :  { %3375 = vmatprep.mubr.msk.bf16.mxu0 %vm744_vm0, %v3512_v23  ;;  %3439 = vmatprep.mubr.msk.bf16.mxu1 %vm744_vm0, %v3513_v24 }
  0xa4   :  { %3376 = vmatmul.mubr.msk.bf16.gmra.mxu0 %vm744_vm0, %v3514_v25  ;;  %3440 = vmatmul.mubr.msk.bf16.gmra.mxu1 %vm744_vm0, %v3515_v26 }
  0xa5   :  { %3379 = vmatprep.mubr.msk.bf16.mxu0 %vm744_vm0, %v3516_v27  ;;  %3443 = vmatprep.mubr.msk.bf16.mxu1 %vm744_vm0, %v3517_v28 }
  0xac   :  { %3380 = vmatmul.mubr.msk.bf16.gmra.mxu0 %vm744_vm0, %v3518_v29  ;;  %3444 = vmatmul.mubr.msk.bf16.gmra.mxu1 %vm744_vm0, %v3519_v30 }
  0xad   :  { %3383 = vmatprep.mubr.msk.bf16.mxu0 %vm744_vm0, %v3520_v31  ;;  %3447 = vmatprep.mubr.msk.bf16.mxu1 %vm744_vm0, %v3521_v32 }
  0xb4   :  { %3384 = vmatmul.mubr.msk.bf16.gmra.mxu0 %vm744_vm0, %v3522_v33  ;;  %3448 = vmatmul.mubr.msk.bf16.gmra.mxu1 %vm744_vm0, %v3523_v34 }
  0xb5   :  { %3387 = vmatprep.mubr.msk.bf16.mxu0 %vm744_vm0, %v3524_v35  ;;  %3451 = vmatprep.mubr.msk.bf16.mxu1 %vm744_vm0, %v3525_v36 }
  0xbc   :  { %3388 = vmatmul.mubr.msk.bf16.gmra.mxu0 %vm744_vm0, %v3526_v37  ;;  %3452 = vmatmul.mubr.msk.bf16.gmra.mxu1 %vm744_vm0, %v3527_v38 }
  0xbd   :  { %3391 = vmatprep.mubr.msk.bf16.mxu0 %vm744_vm0, %v3528_v39  ;;  %3455 = vmatprep.mubr.msk.bf16.mxu1 %vm744_vm0, %v3529_v40 }
  0xc4   :  { %3392 = vmatmul.mubr.msk.bf16.gmra.mxu0 %vm744_vm0, %v3530_v41  ;;  %3456 = vmatmul.mubr.msk.bf16.gmra.mxu1 %vm744_vm0, %v3531_v42 }
  0xc5   :  { %3395 = vmatprep.mubr.msk.bf16.mxu0 %vm744_vm0, %v3532_v43  ;;  %3459 = vmatprep.mubr.msk.bf16.mxu1 %vm744_vm0, %v3533_v44 }
  0xcc   :  { %3396 = vmatmul.mubr.msk.bf16.gmra.mxu0 %vm744_vm0, %v3534_v45  ;;  %3460 = vmatmul.mubr.msk.bf16.gmra.mxu1 %vm744_vm0, %v3535_v46 }
  0xcd   :  { %3399 = vmatprep.mubr.msk.bf16.mxu0 %vm744_vm0, %v3536_v47  ;;  %3463 = vmatprep.mubr.msk.bf16.mxu1 %vm744_vm0, %v3537_v48 }
  0xd4   :  { %3400 = vmatmul.mubr.msk.bf16.gmra.mxu0 %vm744_vm0, %v3538_v49  ;;  %3464 = vmatmul.mubr.msk.bf16.gmra.mxu1 %vm744_vm0, %v3539_v50 }
  0xd5   :  { %3403 = vmatprep.mubr.msk.bf16.mxu0 %vm744_vm0, %v3540_v51  ;;  %3467 = vmatprep.mubr.msk.bf16.mxu1 %vm744_vm0, %v3541_v52 }
  0xdc   :  { %3404 = vmatmul.mubr.msk.bf16.gmra.mxu0 %vm744_vm0, %v3542_v53  ;;  %3468 = vmatmul.mubr.msk.bf16.gmra.mxu1 %vm744_vm0, %v3543_v54 }
  0xdd   :  { %3407 = vmatprep.mubr.msk.bf16.mxu0 %vm744_vm0, %v3544_v55  ;;  %3471 = vmatprep.mubr.msk.bf16.mxu1 %vm744_vm0, %v3545_v56 }
  0xe4   :  { %3408 = vmatmul.mubr.msk.bf16.gmra.mxu0 %vm744_vm0, %v3546_v57  ;;  %3472 = vmatmul.mubr.msk.bf16.gmra.mxu1 %vm744_vm0, %v3547_v58 }
  0xe5   :  { %3411 = vmatprep.mubr.msk.bf16.mxu0 %vm744_vm0, %v3548_v59  ;;  %3475 = vmatprep.mubr.msk.bf16.mxu1 %vm744_vm0, %v3549_v60 }
  0xec   :  { %3412 = vmatmul.mubr.msk.bf16.gmra.mxu0 %vm744_vm0, %v3550_v61  ;;  %3476 = vmatmul.mubr.msk.bf16.gmra.mxu1 %vm744_vm0, %v3551_v62 }
  0xed   :  { %3415 = vmatprep.mubr.msk.bf16.mxu0 %vm744_vm0, %v3552_v63  ;;  %3479 = vmatprep.mubr.msk.bf16.mxu1 %vm744_vm0, %v3553_v0 }
  0xf4   :  { %3416 = vmatmul.mubr.msk.bf16.gmra.mxu0 %vm744_vm0, %v3554_v1  ;;  %3480 = vmatmul.mubr.msk.bf16.gmra.mxu1 %vm744_vm0, %v3555_v2 }
  0xf5   :  { %3419 = vmatprep.mubr.msk.bf16.mxu0 %vm744_vm0, %v3556_v3  ;;  %3483 = vmatprep.mubr.msk.bf16.mxu1 %vm744_vm0, %v3557_v4 }
  0xfc   :  { %3420 = vmatmul.mubr.msk.bf16.gmra.mxu0 %vm744_vm0, %v3558_v5  ;;  %3484 = vmatmul.mubr.msk.bf16.gmra.mxu1 %vm744_vm0, %v3559_v6 }
  0xfd   :  { %3423 = vmatprep.mubr.msk.bf16.mxu0 %vm744_vm0, %v3560_v7  ;;  %3487 = vmatprep.mubr.msk.bf16.mxu1 %vm744_vm0, %v3561_v8 }
 0x104   :  { %3424 = vmatmul.mubr.msk.bf16.gmra.mxu0 %vm744_vm0, %v3562_v9  ;;  %3488 = vmatmul.mubr.msk.bf16.gmra.mxu1 %vm744_vm0, %v3563_v10 }
 0x14c   :  { %v3365_v11 = vpop.f32.mrf.mxu0  ;;  %v3429_v12 = vpop.f32.mrf.mxu1 }
 0x14e   :  { %v975_v13 = vpop.f32.mrf.mxu0  ;;  %v1231_v14 = vpop.f32.mrf.mxu1 }
 0x150   :  { %v3366_v15 = vpop.f32.mrf.mxu0  ;;  %v3430_v16 = vpop.f32.mrf.mxu1 }
 0x151   :  { %v2921_v17 = vpack.c.bf16 %v3366_v15, %v3365_v11  ;;  %v3081_v18 = vpack.c.bf16 %v3430_v16, %v3429_v12 }
 0x152   :  { %v978_v19 = vpop.f32.mrf.mxu0  ;;  %v1234_v20 = vpop.f32.mrf.mxu1 }
 0x153   :  { %3233 = vst [vmem:[#allocation3 + $0x8] sm:$0xff] %v2921_v17   ;;  %3265 = vst [vmem:[#allocation3 + $0x108] sm:$0xff] %v3081_v18   ;;  %v2916_v21 = vpack.c.bf16 %v978_v19, %v975_v13  ;;  %v3076_v22 = vpack.c.bf16 %v1234_v20, %v1231_v14 }
 0x154   :  { %v3369_v23 = vpop.f32.mrf.mxu0  ;;  %v3433_v24 = vpop.f32.mrf.mxu1 }
 0x155   :  { %2917 = vst [vmem:[#allocation3] sm:$0xff] %v2916_v21   ;;  %3264 = vst [vmem:[#allocation3 + $0x100] sm:$0xff] %v3076_v22  }
 0x156   :  { %v991_v25 = vpop.f32.mrf.mxu0  ;;  %v1247_v26 = vpop.f32.mrf.mxu1 }
 0x158   :  { %v3370_v27 = vpop.f32.mrf.mxu0  ;;  %v3434_v28 = vpop.f32.mrf.mxu1 }
 0x159   :  { %v2931_v29 = vpack.c.bf16 %v3370_v27, %v3369_v23  ;;  %v3091_v30 = vpack.c.bf16 %v3434_v28, %v3433_v24 }
 0x15a   :  { %v994_v31 = vpop.f32.mrf.mxu0  ;;  %v1250_v32 = vpop.f32.mrf.mxu1 }
 0x15b   :  { %3235 = vst [vmem:[#allocation3 + $0x18] sm:$0xff] %v2931_v29   ;;  %3267 = vst [vmem:[#allocation3 + $0x118] sm:$0xff] %v3091_v30   ;;  %v2926_v33 = vpack.c.bf16 %v994_v31, %v991_v25  ;;  %v3086_v34 = vpack.c.bf16 %v1250_v32, %v1247_v26 }
 0x15c   :  { %v3373_v35 = vpop.f32.mrf.mxu0  ;;  %v3437_v36 = vpop.f32.mrf.mxu1 }
 0x15d   :  { %3234 = vst [vmem:[#allocation3 + $0x10] sm:$0xff] %v2926_v33   ;;  %3266 = vst [vmem:[#allocation3 + $0x110] sm:$0xff] %v3086_v34  }
 0x15e   :  { %v1007_v37 = vpop.f32.mrf.mxu0  ;;  %v1263_v38 = vpop.f32.mrf.mxu1 }
 0x160   :  { %v3374_v39 = vpop.f32.mrf.mxu0  ;;  %v3438_v40 = vpop.f32.mrf.mxu1 }
 0x161   :  { %v2941_v41 = vpack.c.bf16 %v3374_v39, %v3373_v35  ;;  %v3101_v42 = vpack.c.bf16 %v3438_v40, %v3437_v36 }
 0x162   :  { %v1010_v43 = vpop.f32.mrf.mxu0  ;;  %v1266_v44 = vpop.f32.mrf.mxu1 }
 0x163   :  { %3237 = vst [vmem:[#allocation3 + $0x28] sm:$0xff] %v2941_v41   ;;  %3269 = vst [vmem:[#allocation3 + $0x128] sm:$0xff] %v3101_v42   ;;  %v2936_v45 = vpack.c.bf16 %v1010_v43, %v1007_v37  ;;  %v3096_v46 = vpack.c.bf16 %v1266_v44, %v1263_v38 }
 0x164   :  { %v3377_v47 = vpop.f32.mrf.mxu0  ;;  %v3441_v48 = vpop.f32.mrf.mxu1 }
 0x165   :  { %3236 = vst [vmem:[#allocation3 + $0x20] sm:$0xff] %v2936_v45   ;;  %3268 = vst [vmem:[#allocation3 + $0x120] sm:$0xff] %v3096_v46  }
 0x166   :  { %v1023_v49 = vpop.f32.mrf.mxu0  ;;  %v1279_v50 = vpop.f32.mrf.mxu1 }
 0x168   :  { %v3378_v51 = vpop.f32.mrf.mxu0  ;;  %v3442_v52 = vpop.f32.mrf.mxu1 }
 0x169   :  { %v2951_v53 = vpack.c.bf16 %v3378_v51, %v3377_v47  ;;  %v3111_v54 = vpack.c.bf16 %v3442_v52, %v3441_v48 }
 0x16a   :  { %v1026_v55 = vpop.f32.mrf.mxu0  ;;  %v1282_v56 = vpop.f32.mrf.mxu1 }
 0x16b   :  { %3239 = vst [vmem:[#allocation3 + $0x38] sm:$0xff] %v2951_v53   ;;  %3271 = vst [vmem:[#allocation3 + $0x138] sm:$0xff] %v3111_v54   ;;  %v2946_v57 = vpack.c.bf16 %v1026_v55, %v1023_v49  ;;  %v3106_v58 = vpack.c.bf16 %v1282_v56, %v1279_v50 }
 0x16c   :  { %v3381_v59 = vpop.f32.mrf.mxu0  ;;  %v3445_v60 = vpop.f32.mrf.mxu1 }
 0x16d   :  { %3238 = vst [vmem:[#allocation3 + $0x30] sm:$0xff] %v2946_v57   ;;  %3270 = vst [vmem:[#allocation3 + $0x130] sm:$0xff] %v3106_v58  }
 0x16e   :  { %v1039_v61 = vpop.f32.mrf.mxu0  ;;  %v1295_v62 = vpop.f32.mrf.mxu1 }
 0x170   :  { %v3382_v63 = vpop.f32.mrf.mxu0  ;;  %v3446_v0 = vpop.f32.mrf.mxu1 }
 0x171   :  { %v2961_v1 = vpack.c.bf16 %v3382_v63, %v3381_v59  ;;  %v3121_v2 = vpack.c.bf16 %v3446_v0, %v3445_v60 }
 0x172   :  { %v1042_v3 = vpop.f32.mrf.mxu0  ;;  %v1298_v4 = vpop.f32.mrf.mxu1 }
 0x173   :  { %3241 = vst [vmem:[#allocation3 + $0x48] sm:$0xff] %v2961_v1   ;;  %3273 = vst [vmem:[#allocation3 + $0x148] sm:$0xff] %v3121_v2   ;;  %v2956_v5 = vpack.c.bf16 %v1042_v3, %v1039_v61  ;;  %v3116_v6 = vpack.c.bf16 %v1298_v4, %v1295_v62 }
 0x174   :  { %v3385_v7 = vpop.f32.mrf.mxu0  ;;  %v3449_v8 = vpop.f32.mrf.mxu1 }
 0x175   :  { %3240 = vst [vmem:[#allocation3 + $0x40] sm:$0xff] %v2956_v5   ;;  %3272 = vst [vmem:[#allocation3 + $0x140] sm:$0xff] %v3116_v6  }
 0x176   :  { %v1055_v9 = vpop.f32.mrf.mxu0  ;;  %v1311_v10 = vpop.f32.mrf.mxu1 }
 0x178   :  { %v3386_v11 = vpop.f32.mrf.mxu0  ;;  %v3450_v12 = vpop.f32.mrf.mxu1 }
 0x179   :  { %v2971_v13 = vpack.c.bf16 %v3386_v11, %v3385_v7  ;;  %v3131_v14 = vpack.c.bf16 %v3450_v12, %v3449_v8 }
 0x17a   :  { %v1058_v15 = vpop.f32.mrf.mxu0  ;;  %v1314_v16 = vpop.f32.mrf.mxu1 }
 0x17b   :  { %3243 = vst [vmem:[#allocation3 + $0x58] sm:$0xff] %v2971_v13   ;;  %3275 = vst [vmem:[#allocation3 + $0x158] sm:$0xff] %v3131_v14   ;;  %v2966_v17 = vpack.c.bf16 %v1058_v15, %v1055_v9  ;;  %v3126_v18 = vpack.c.bf16 %v1314_v16, %v1311_v10 }
 0x17c   :  { %v3389_v19 = vpop.f32.mrf.mxu0  ;;  %v3453_v20 = vpop.f32.mrf.mxu1 }
 0x17d   :  { %3242 = vst [vmem:[#allocation3 + $0x50] sm:$0xff] %v2966_v17   ;;  %3274 = vst [vmem:[#allocation3 + $0x150] sm:$0xff] %v3126_v18  }
 0x17e   :  { %v1071_v21 = vpop.f32.mrf.mxu0  ;;  %v1327_v22 = vpop.f32.mrf.mxu1 }
 0x180   :  { %v3390_v23 = vpop.f32.mrf.mxu0  ;;  %v3454_v24 = vpop.f32.mrf.mxu1 }
 0x181   :  { %v2981_v25 = vpack.c.bf16 %v3390_v23, %v3389_v19  ;;  %v3141_v26 = vpack.c.bf16 %v3454_v24, %v3453_v20 }
 0x182   :  { %v1074_v27 = vpop.f32.mrf.mxu0  ;;  %v1330_v28 = vpop.f32.mrf.mxu1 }
 0x183   :  { %3245 = vst [vmem:[#allocation3 + $0x68] sm:$0xff] %v2981_v25   ;;  %3277 = vst [vmem:[#allocation3 + $0x168] sm:$0xff] %v3141_v26   ;;  %v2976_v29 = vpack.c.bf16 %v1074_v27, %v1071_v21  ;;  %v3136_v30 = vpack.c.bf16 %v1330_v28, %v1327_v22 }
 0x184   :  { %v3393_v31 = vpop.f32.mrf.mxu0  ;;  %v3457_v32 = vpop.f32.mrf.mxu1 }
 0x185   :  { %3244 = vst [vmem:[#allocation3 + $0x60] sm:$0xff] %v2976_v29   ;;  %3276 = vst [vmem:[#allocation3 + $0x160] sm:$0xff] %v3136_v30  }
 0x186   :  { %v1087_v33 = vpop.f32.mrf.mxu0  ;;  %v1343_v34 = vpop.f32.mrf.mxu1 }
 0x188   :  { %v3394_v35 = vpop.f32.mrf.mxu0  ;;  %v3458_v36 = vpop.f32.mrf.mxu1 }
 0x189   :  { %v2991_v37 = vpack.c.bf16 %v3394_v35, %v3393_v31  ;;  %v3151_v38 = vpack.c.bf16 %v3458_v36, %v3457_v32 }
 0x18a   :  { %v1090_v39 = vpop.f32.mrf.mxu0  ;;  %v1346_v40 = vpop.f32.mrf.mxu1 }
 0x18b   :  { %3247 = vst [vmem:[#allocation3 + $0x78] sm:$0xff] %v2991_v37   ;;  %3279 = vst [vmem:[#allocation3 + $0x178] sm:$0xff] %v3151_v38   ;;  %v2986_v41 = vpack.c.bf16 %v1090_v39, %v1087_v33  ;;  %v3146_v42 = vpack.c.bf16 %v1346_v40, %v1343_v34 }
 0x18c   :  { %v3397_v43 = vpop.f32.mrf.mxu0  ;;  %v3461_v44 = vpop.f32.mrf.mxu1 }
 0x18d   :  { %3246 = vst [vmem:[#allocation3 + $0x70] sm:$0xff] %v2986_v41   ;;  %3278 = vst [vmem:[#allocation3 + $0x170] sm:$0xff] %v3146_v42  }
 0x18e   :  { %v1103_v45 = vpop.f32.mrf.mxu0  ;;  %v1359_v46 = vpop.f32.mrf.mxu1 }
 0x190   :  { %v3398_v47 = vpop.f32.mrf.mxu0  ;;  %v3462_v48 = vpop.f32.mrf.mxu1 }
 0x191   :  { %v3001_v49 = vpack.c.bf16 %v3398_v47, %v3397_v43  ;;  %v3161_v50 = vpack.c.bf16 %v3462_v48, %v3461_v44 }
 0x192   :  { %v1106_v51 = vpop.f32.mrf.mxu0  ;;  %v1362_v52 = vpop.f32.mrf.mxu1 }
 0x193   :  { %3249 = vst [vmem:[#allocation3 + $0x88] sm:$0xff] %v3001_v49   ;;  %3281 = vst [vmem:[#allocation3 + $0x188] sm:$0xff] %v3161_v50   ;;  %v2996_v53 = vpack.c.bf16 %v1106_v51, %v1103_v45  ;;  %v3156_v54 = vpack.c.bf16 %v1362_v52, %v1359_v46 }
 0x194   :  { %v3401_v55 = vpop.f32.mrf.mxu0  ;;  %v3465_v56 = vpop.f32.mrf.mxu1 }
 0x195   :  { %3248 = vst [vmem:[#allocation3 + $0x80] sm:$0xff] %v2996_v53   ;;  %3280 = vst [vmem:[#allocation3 + $0x180] sm:$0xff] %v3156_v54  }
 0x196   :  { %v1119_v57 = vpop.f32.mrf.mxu0  ;;  %v1375_v58 = vpop.f32.mrf.mxu1 }
 0x198   :  { %v3402_v59 = vpop.f32.mrf.mxu0  ;;  %v3466_v60 = vpop.f32.mrf.mxu1 }
 0x199   :  { %v3011_v61 = vpack.c.bf16 %v3402_v59, %v3401_v55  ;;  %v3171_v62 = vpack.c.bf16 %v3466_v60, %v3465_v56 }
 0x19a   :  { %v1122_v63 = vpop.f32.mrf.mxu0  ;;  %v1378_v0 = vpop.f32.mrf.mxu1 }
 0x19b   :  { %3251 = vst [vmem:[#allocation3 + $0x98] sm:$0xff] %v3011_v61   ;;  %3283 = vst [vmem:[#allocation3 + $0x198] sm:$0xff] %v3171_v62   ;;  %v3006_v1 = vpack.c.bf16 %v1122_v63, %v1119_v57  ;;  %v3166_v2 = vpack.c.bf16 %v1378_v0, %v1375_v58 }
 0x19c   :  { %v3405_v3 = vpop.f32.mrf.mxu0  ;;  %v3469_v4 = vpop.f32.mrf.mxu1 }
 0x19d   :  { %3250 = vst [vmem:[#allocation3 + $0x90] sm:$0xff] %v3006_v1   ;;  %3282 = vst [vmem:[#allocation3 + $0x190] sm:$0xff] %v3166_v2  }
 0x19e   :  { %v1135_v5 = vpop.f32.mrf.mxu0  ;;  %v1391_v6 = vpop.f32.mrf.mxu1 }
 0x1a0   :  { %v3406_v7 = vpop.f32.mrf.mxu0  ;;  %v3470_v8 = vpop.f32.mrf.mxu1 }
 0x1a1   :  { %v3021_v9 = vpack.c.bf16 %v3406_v7, %v3405_v3  ;;  %v3181_v10 = vpack.c.bf16 %v3470_v8, %v3469_v4 }
 0x1a2   :  { %v1138_v11 = vpop.f32.mrf.mxu0  ;;  %v1394_v12 = vpop.f32.mrf.mxu1 }
 0x1a3   :  { %3253 = vst [vmem:[#allocation3 + $0xa8] sm:$0xff] %v3021_v9   ;;  %3285 = vst [vmem:[#allocation3 + $0x1a8] sm:$0xff] %v3181_v10   ;;  %v3016_v13 = vpack.c.bf16 %v1138_v11, %v1135_v5  ;;  %v3176_v14 = vpack.c.bf16 %v1394_v12, %v1391_v6 }
 0x1a4   :  { %v3409_v15 = vpop.f32.mrf.mxu0  ;;  %v3473_v16 = vpop.f32.mrf.mxu1 }
 0x1a5   :  { %3252 = vst [vmem:[#allocation3 + $0xa0] sm:$0xff] %v3016_v13   ;;  %3284 = vst [vmem:[#allocation3 + $0x1a0] sm:$0xff] %v3176_v14  }
 0x1a6   :  { %v1151_v17 = vpop.f32.mrf.mxu0  ;;  %v1407_v18 = vpop.f32.mrf.mxu1 }
 0x1a8   :  { %v3410_v19 = vpop.f32.mrf.mxu0  ;;  %v3474_v20 = vpop.f32.mrf.mxu1 }
 0x1a9   :  { %v3031_v21 = vpack.c.bf16 %v3410_v19, %v3409_v15  ;;  %v3191_v22 = vpack.c.bf16 %v3474_v20, %v3473_v16 }
 0x1aa   :  { %v1154_v23 = vpop.f32.mrf.mxu0  ;;  %v1410_v24 = vpop.f32.mrf.mxu1 }
 0x1ab   :  { %3255 = vst [vmem:[#allocation3 + $0xb8] sm:$0xff] %v3031_v21   ;;  %3287 = vst [vmem:[#allocation3 + $0x1b8] sm:$0xff] %v3191_v22   ;;  %v3026_v25 = vpack.c.bf16 %v1154_v23, %v1151_v17  ;;  %v3186_v26 = vpack.c.bf16 %v1410_v24, %v1407_v18 }
 0x1ac   :  { %v3413_v27 = vpop.f32.mrf.mxu0  ;;  %v3477_v28 = vpop.f32.mrf.mxu1 }
 0x1ad   :  { %3254 = vst [vmem:[#allocation3 + $0xb0] sm:$0xff] %v3026_v25   ;;  %3286 = vst [vmem:[#allocation3 + $0x1b0] sm:$0xff] %v3186_v26  }
 0x1ae   :  { %v1167_v29 = vpop.f32.mrf.mxu0  ;;  %v1423_v30 = vpop.f32.mrf.mxu1 }
 0x1b0   :  { %v3414_v31 = vpop.f32.mrf.mxu0  ;;  %v3478_v32 = vpop.f32.mrf.mxu1 }
 0x1b1   :  { %v3041_v33 = vpack.c.bf16 %v3414_v31, %v3413_v27  ;;  %v3201_v34 = vpack.c.bf16 %v3478_v32, %v3477_v28 }
 0x1b2   :  { %v1170_v35 = vpop.f32.mrf.mxu0  ;;  %v1426_v36 = vpop.f32.mrf.mxu1 }
 0x1b3   :  { %3257 = vst [vmem:[#allocation3 + $0xc8] sm:$0xff] %v3041_v33   ;;  %3289 = vst [vmem:[#allocation3 + $0x1c8] sm:$0xff] %v3201_v34   ;;  %v3036_v37 = vpack.c.bf16 %v1170_v35, %v1167_v29  ;;  %v3196_v38 = vpack.c.bf16 %v1426_v36, %v1423_v30 }
 0x1b4   :  { %v3417_v39 = vpop.f32.mrf.mxu0  ;;  %v3481_v40 = vpop.f32.mrf.mxu1 }
 0x1b5   :  { %3256 = vst [vmem:[#allocation3 + $0xc0] sm:$0xff] %v3036_v37   ;;  %3288 = vst [vmem:[#allocation3 + $0x1c0] sm:$0xff] %v3196_v38  }
 0x1b6   :  { %v1183_v41 = vpop.f32.mrf.mxu0  ;;  %v1439_v42 = vpop.f32.mrf.mxu1 }
 0x1b8   :  { %v3418_v43 = vpop.f32.mrf.mxu0  ;;  %v3482_v44 = vpop.f32.mrf.mxu1 }
 0x1b9   :  { %v3051_v45 = vpack.c.bf16 %v3418_v43, %v3417_v39  ;;  %v3211_v46 = vpack.c.bf16 %v3482_v44, %v3481_v40 }
 0x1ba   :  { %v1186_v47 = vpop.f32.mrf.mxu0  ;;  %v1442_v48 = vpop.f32.mrf.mxu1 }
 0x1bb   :  { %3259 = vst [vmem:[#allocation3 + $0xd8] sm:$0xff] %v3051_v45   ;;  %3291 = vst [vmem:[#allocation3 + $0x1d8] sm:$0xff] %v3211_v46   ;;  %v3046_v49 = vpack.c.bf16 %v1186_v47, %v1183_v41  ;;  %v3206_v50 = vpack.c.bf16 %v1442_v48, %v1439_v42 }
 0x1bc   :  { %v3421_v51 = vpop.f32.mrf.mxu0  ;;  %v3485_v52 = vpop.f32.mrf.mxu1 }
 0x1bd   :  { %3258 = vst [vmem:[#allocation3 + $0xd0] sm:$0xff] %v3046_v49   ;;  %3290 = vst [vmem:[#allocation3 + $0x1d0] sm:$0xff] %v3206_v50  }
 0x1be   :  { %v1199_v53 = vpop.f32.mrf.mxu0  ;;  %v1455_v54 = vpop.f32.mrf.mxu1 }
 0x1c0   :  { %v3422_v55 = vpop.f32.mrf.mxu0  ;;  %v3486_v56 = vpop.f32.mrf.mxu1 }
 0x1c1   :  { %v3061_v57 = vpack.c.bf16 %v3422_v55, %v3421_v51  ;;  %v3221_v58 = vpack.c.bf16 %v3486_v56, %v3485_v52 }
 0x1c2   :  { %v1202_v59 = vpop.f32.mrf.mxu0  ;;  %v1458_v60 = vpop.f32.mrf.mxu1 }
 0x1c3   :  { %3261 = vst [vmem:[#allocation3 + $0xe8] sm:$0xff] %v3061_v57   ;;  %3293 = vst [vmem:[#allocation3 + $0x1e8] sm:$0xff] %v3221_v58   ;;  %v3056_v61 = vpack.c.bf16 %v1202_v59, %v1199_v53  ;;  %v3216_v62 = vpack.c.bf16 %v1458_v60, %v1455_v54 }
 0x1c4   :  { %v3425_v63 = vpop.f32.mrf.mxu0  ;;  %v3489_v0 = vpop.f32.mrf.mxu1 }
 0x1c5   :  { %3260 = vst [vmem:[#allocation3 + $0xe0] sm:$0xff] %v3056_v61   ;;  %3292 = vst [vmem:[#allocation3 + $0x1e0] sm:$0xff] %v3216_v62  }
 0x1c6   :  { %v1215_v1 = vpop.f32.mrf.mxu0  ;;  %v1471_v2 = vpop.f32.mrf.mxu1 }
 0x1c8   :  { %v3426_v3 = vpop.f32.mrf.mxu0  ;;  %v3490_v4 = vpop.f32.mrf.mxu1 }
 0x1c9   :  { %v3071_v5 = vpack.c.bf16 %v3426_v3, %v3425_v63  ;;  %v3231_v6 = vpack.c.bf16 %v3490_v4, %v3489_v0 }
 0x1ca   :  { %v1218_v7 = vpop.f32.mrf.mxu0  ;;  %v1474_v8 = vpop.f32.mrf.mxu1 }
 0x1cb   :  { %3263 = vst [vmem:[#allocation3 + $0xf8] sm:$0xff] %v3071_v5   ;;  %3295 = vst [vmem:[#allocation3 + $0x1f8] sm:$0xff] %v3231_v6   ;;  %v3066_v9 = vpack.c.bf16 %v1218_v7, %v1215_v1  ;;  %v3226_v10 = vpack.c.bf16 %v1474_v8, %v1471_v2 }
 0x1cd   :  { %3262 = vst [vmem:[#allocation3 + $0xf0] sm:$0xff] %v3066_v9   ;;  %3294 = vst [vmem:[#allocation3 + $0x1f0] sm:$0xff] %v3226_v10  }
 0x1ce   :  { %3575 = shalt.err (!%p3572_p4)
}
 0x1cf   :  { %s3588_s6 = smov 64   ;;  %s3589_s7 = smov 4  }
 0x1d0   :  { %2524 = dma.vmem_to_hbm [thread:$0]  %s2519_s30, 8192, %s3887_s4, [#allocation4], %s3588_s6, %s3588_s6, %s3589_s7  }
 0x1d1   :  { %3584 = dma.done.wait [#allocation4], 8192  }
 0x1d2   :  { %3585 = vsyncadd [#allocation4], 4294959104 }
 0x1d3   :  { %2528 = vsyncpa [#allocation4], 1 }

</bundles_post_ra>
